<compile_context>
chip_gen: v6e
topology: v6e:2x2x1
jax: 0.10.0
libtpu: 0.0.40
codegen_flags: <defaults>
</compile_context>

<pallas_src>
import functools

import jax
import jax.numpy as jnp
from jax.experimental import pallas as pl
from jax.experimental.pallas import tpu as pltpu


def _round_up(v, m):
    return ((v + m - 1) // m) * m


def _mlp_kernel(num_hidden, x_ref, z_ref, *refs):
    """Fused MLP forward for one batch tile.

    refs layout:
      w_x, w_z, b_in,
      (w_h0, b_h0, ..., w_h{num_hidden-1}, b_h{num_hidden-1}),
      w_out_t,
      out_ref                                    # (out_pad, block_m) slab
    """
    out_ref = refs[-1]
    w_x_ref, w_z_ref, b_in_ref = refs[0], refs[1], refs[2]
    w_out_t_ref = refs[-2]
    hidden_refs = refs[3:-2]

    # Input layer: x @ Wx + z @ Wz + b  ( == hstack(x, z) @ W_in + b ).
    # bf16 operands feed the MXU at native rate; accumulate in f32.
    h = (jnp.dot(x_ref[...].astype(jnp.bfloat16), w_x_ref[...],
                 preferred_element_type=jnp.float32)
         + jnp.dot(z_ref[...].astype(jnp.bfloat16), w_z_ref[...],
                   preferred_element_type=jnp.float32)
         + b_in_ref[...])
    h = jax.nn.sigmoid(h)                        # f32 on the EUP

    # Hidden layers + sigmoid.
    for li in range(num_hidden):
        w_ref = hidden_refs[2 * li]
        b_ref = hidden_refs[2 * li + 1]
        h = jnp.dot(h.astype(jnp.bfloat16), w_ref[...],
                    preferred_element_type=jnp.float32) + b_ref[...]
        h = jax.nn.sigmoid(h)

    # Output layer (no bias), computed already transposed:
    #   out_t[o, m] = sum_d w_out_t[o, d] * h[m, d]
    # so the final store is a lane-dense (out_pad, block_m) slab.
    out_t = jax.lax.dot_general(
        w_out_t_ref[...], h.astype(jnp.bfloat16),
        dimension_numbers=(((1,), (1,)), ((), ())),
        preferred_element_type=jnp.float32)
    out_ref[...] = out_t.astype(out_ref.dtype)


def _choose_block_m(n):
    """Largest 128-multiple tile dividing n that keeps >= 2 grid steps (so the
    'parallel' axis can shard across v7x's 2 TensorCores); otherwise the
    largest tile that divides n."""
    for bm in (2048, 1024, 512, 256, 128):
        if n % bm == 0 and n // bm >= 2:
            return bm
    for bm in (2048, 1024, 512, 256, 128):
        if n % bm == 0:
            return bm
    raise ValueError("padded batch size must be a multiple of 128")


def one_hot_model_forward(x, z, kparams, *, block_m=None):
    """Pallas forward for OneHotModel.

    x: (N, in_dim) f32, z: (N, part_dim) f32 (one-hot partition encoding).
    kparams: output of prepare_kernel_params (padded / split / bf16 weights).
    Returns (N, out_dim) f32, matching the PyTorch forward to bf16-matmul
    precision. Works for any N >= 1 (batch is zero-padded to a 128 multiple).
    """
    n, in_dim = x.shape
    _, part_dim = z.shape
    out_dim = kparams["out_dim"]
    w_out_t = kparams["w_out_t"]                 # (out_pad, H_last_pad)
    out_pad = w_out_t.shape[0]
    num_hidden = len(kparams["hidden"])

    # Pad the batch to a sublane/lane friendly multiple of 128.
    n_pad = _round_up(max(n, 128), 128)
    if n_pad != n:
        x = jnp.pad(x, ((0, n_pad - n), (0, 0)))
        z = jnp.pad(z, ((0, n_pad - n), (0, 0)))

    if block_m is None:
        block_m = _choose_block_m(n_pad)
    assert n_pad % block_m == 0 and block_m % 128 == 0

    grid = (n_pad // block_m,)

    # Flatten params into positional args matching the kernel.
    weight_args = [kparams["w_x"], kparams["w_z"], kparams["b_in"]]
    for (w, b) in kparams["hidden"]:
        weight_args += [w, b]
    weight_args += [w_out_t]

    # Batch-tiled x / z; weights and biases are full-array blocks broadcast to
    # every grid step (constant index_map -> fetched once, kept VMEM-resident).
    in_specs = [
        pl.BlockSpec((block_m, in_dim), lambda i: (i, 0)),
        pl.BlockSpec((block_m, part_dim), lambda i: (i, 0)),
    ]
    for w in weight_args:
        in_specs.append(pl.BlockSpec(w.shape, lambda i: (0, 0)))
    # Transposed, lane-dense output slab: last dim = block_m (>= 128).
    out_spec = pl.BlockSpec((out_pad, block_m), lambda i: (0, i))

    # Advisory cost estimate for XLA's scheduler.
    h_dims = [kparams["w_x"].shape[1]] + [w.shape[1] for (w, _) in kparams["hidden"]]
    flops = 2 * n_pad * (in_dim + part_dim) * h_dims[0]
    for a, b_ in zip(h_dims[:-1], h_dims[1:]):
        flops += 2 * n_pad * a * b_
    flops += 2 * n_pad * h_dims[-1] * out_pad
    transcendentals = n_pad * sum(h_dims)        # one sigmoid per hidden unit
    bytes_accessed = (x.size * x.dtype.itemsize + z.size * z.dtype.itemsize
                      + sum(int(w.size) * w.dtype.itemsize for w in weight_args)
                      + out_pad * n_pad * 4)

    kernel = functools.partial(_mlp_kernel, num_hidden)

    out_t = pl.pallas_call(
        kernel,
        out_shape=jax.ShapeDtypeStruct((out_pad, n_pad), jnp.float32),
        grid_spec=pltpu.PrefetchScalarGridSpec(
            num_scalar_prefetch=0,
            grid=grid,
            in_specs=in_specs,
            out_specs=out_spec,
        ),
        compiler_params=pltpu.CompilerParams(
            dimension_semantics=("parallel",)),
        cost_estimate=pl.CostEstimate(
            flops=int(flops),
            transcendentals=int(transcendentals),
            bytes_accessed=int(bytes_accessed)),
    )(x, z, *weight_args)

    # Drop the output / batch padding and return PyTorch-shaped (N, out_dim).
    return out_t[:out_dim, :n].T


def init_params(key, in_dim, hidden_dim, out_dim, part_dim):
    """Deterministic init mimicking nn.Linear's U(-1/sqrt(fan_in), +...).
    Logical (unpadded, f32) params; weights stored (fan_in, fan_out) so that
    h @ W matches PyTorch's x @ W.T."""
    def linear(key, fan_in, fan_out, bias=True):
        kw, kb = jax.random.split(key)
        bound = 1.0 / jnp.sqrt(float(fan_in))
        w = jax.random.uniform(kw, (fan_in, fan_out), jnp.float32, -bound, bound)
        if bias:
            b = jax.random.uniform(kb, (1, fan_out), jnp.float32, -bound, bound)
            return w, b
        return w, None

    keys = jax.random.split(key, len(hidden_dim) + 1)
    w_in, b_in = linear(keys[0], in_dim + part_dim, hidden_dim[0])
    hidden = []
    for i in range(len(hidden_dim) - 1):
        w, b = linear(keys[i + 1], hidden_dim[i], hidden_dim[i + 1])
        hidden.append((w, b))
    w_out, _ = linear(keys[-1], hidden_dim[-1], out_dim, bias=False)
    return {"w_in": w_in, "b_in": b_in, "hidden": hidden, "w_out": w_out}


def prepare_kernel_params(params, in_dim, part_dim, *,
                          width_pad=128, out_pad_to=8,
                          compute_dtype=jnp.bfloat16):
    """Split w_in into w_x/w_z, zero-pad hidden widths to a 128 multiple and
    out_dim to a multiple of 8, transpose w_out, cast matmul operands to bf16.
    Exactly preserves the forward semantics (pads are zero and sliced off)."""
    def pad_to(a, rows, cols):
        return jnp.pad(a, ((0, rows - a.shape[0]), (0, cols - a.shape[1])))

    w_in, b_in = params["w_in"], params["b_in"]
    h0 = w_in.shape[1]
    h0_pad = _round_up(h0, width_pad)

    w_x = pad_to(w_in[:in_dim, :], in_dim, h0_pad).astype(compute_dtype)
    w_z = pad_to(w_in[in_dim:, :], part_dim, h0_pad).astype(compute_dtype)
    b_in_p = pad_to(b_in, 1, h0_pad).astype(jnp.float32)

    hidden = []
    prev_pad = h0_pad
    for (w, b) in params["hidden"]:
        hout = w.shape[1]
        hout_pad = _round_up(hout, width_pad)
        hidden.append((pad_to(w, prev_pad, hout_pad).astype(compute_dtype),
                       pad_to(b, 1, hout_pad).astype(jnp.float32)))
        prev_pad = hout_pad

    w_out = params["w_out"]                       # (H_last, out_dim)
    out_dim = w_out.shape[1]
    out_pad = _round_up(out_dim, out_pad_to)
    w_out_t = pad_to(w_out.T, out_pad, prev_pad).astype(compute_dtype)

    return {"w_x": w_x, "w_z": w_z, "b_in": b_in_p, "hidden": hidden,
            "w_out_t": w_out_t, "out_dim": out_dim}


def reference_forward(x, z, params):
    """Pure-JAX f32 reference matching the PyTorch forward."""
    inp = jnp.concatenate([x, z], axis=1)
    h = jax.nn.sigmoid(inp @ params["w_in"] + params["b_in"])
    for (w, b) in params["hidden"]:
        h = jax.nn.sigmoid(h @ w + b)
    return h @ params["w_out"]


if __name__ == "__main__":
    # Small shapes consistent with the module: 2-D coordinates, one-hot
    # partition indicator of size 3, two hidden layers of width 32, scalar out.
    in_dim, part_dim, hidden_dim, out_dim = 2, 3, (32, 32), 1
    n = 256   # -> block_m = 128, grid = (2,) (keeps both v7x TCs busy)

    key = jax.random.PRNGKey(0)
    kx, kz, kp = jax.random.split(key, 3)
    x = jax.random.normal(kx, (n, in_dim), jnp.float32)
    z_idx = jax.random.randint(kz, (n,), 0, part_dim)
    z = jax.nn.one_hot(z_idx, part_dim, dtype=jnp.float32)

    params = init_params(kp, in_dim, hidden_dim, out_dim, part_dim)
    kparams = prepare_kernel_params(params, in_dim, part_dim)

    out = one_hot_model_forward(x, z, kparams)
    out = jax.block_until_ready(out)

    ref = reference_forward(x, z, params)
    assert out.shape == (n, out_dim)
    max_err = float(jnp.max(jnp.abs(out - ref)))
    # bf16 matmul operands -> relaxed tolerance vs. the f32 reference.
    assert jnp.allclose(out, ref, atol=3e-2, rtol=3e-2), f"mismatch: {max_err}"
    print("KERNEL_OK")
</pallas_src>

<mosaic_0001>
module attributes {stable_mosaic.version = 11 : i64} {
  func.func @_mlp_kernel(%arg0: i32, %arg1: memref<128x2xf32, #tpu.memory_space<vmem>>, %arg2: memref<128x3xf32, #tpu.memory_space<vmem>>, %arg3: memref<2x128xbf16, #tpu.memory_space<vmem>>, %arg4: memref<3x128xbf16, #tpu.memory_space<vmem>>, %arg5: memref<1x128xf32, #tpu.memory_space<vmem>>, %arg6: memref<128x128xbf16, #tpu.memory_space<vmem>>, %arg7: memref<1x128xf32, #tpu.memory_space<vmem>>, %arg8: memref<8x128xbf16, #tpu.memory_space<vmem>>, %arg9: memref<8x128xf32, #tpu.memory_space<vmem>>) attributes {dimension_semantics = [#tpu.dimension_semantics<parallel>], iteration_bounds = array<i64: 2>, scalar_prefetch = 0 : i64, scratch_operands = 0 : i64, tpu.core_type = #tpu.core_type<tc>, window_params = [{transform_indices = @transform_0, window_bounds = array<i64: 128, 2>}, {transform_indices = @transform_1, window_bounds = array<i64: 128, 3>}, {pipeline_mode = #tpu.pipeline_mode<synchronous>, transform_indices = @transform_2, window_bounds = array<i64: 2, 128>}, {pipeline_mode = #tpu.pipeline_mode<synchronous>, transform_indices = @transform_3, window_bounds = array<i64: 3, 128>}, {pipeline_mode = #tpu.pipeline_mode<synchronous>, transform_indices = @transform_4, window_bounds = array<i64: 1, 128>}, {pipeline_mode = #tpu.pipeline_mode<synchronous>, transform_indices = @transform_5, window_bounds = array<i64: 128, 128>}, {pipeline_mode = #tpu.pipeline_mode<synchronous>, transform_indices = @transform_6, window_bounds = array<i64: 1, 128>}, {pipeline_mode = #tpu.pipeline_mode<synchronous>, transform_indices = @transform_7, window_bounds = array<i64: 8, 128>}, {transform_indices = @transform_8, window_bounds = array<i64: 8, 128>}]} {
    %c0 = arith.constant 0 : index
    %c0_0 = arith.constant 0 : index
    %0 = vector.load %arg1[%c0, %c0_0] : memref<128x2xf32, #tpu.memory_space<vmem>>, vector<128x2xf32>
    %1 = arith.truncf %0 : vector<128x2xf32> to vector<128x2xbf16>
    %c0_1 = arith.constant 0 : index
    %c0_2 = arith.constant 0 : index
    %2 = vector.load %arg3[%c0_1, %c0_2] : memref<2x128xbf16, #tpu.memory_space<vmem>>, vector<2x128xbf16>
    %cst = arith.constant dense<0.000000e+00> : vector<128x128xf32>
    %3 = tpu.matmul %1, %2, %cst {dimension_numbers = #tpu.dot_dimension_numbers<[1], [0], [0], [1], [0, 0, 1, 1], [], []>} : vector<128x2xbf16>, vector<2x128xbf16>, vector<128x128xf32> -> vector<128x128xf32>
    %c0_3 = arith.constant 0 : index
    %c0_4 = arith.constant 0 : index
    %4 = vector.load %arg2[%c0_3, %c0_4] : memref<128x3xf32, #tpu.memory_space<vmem>>, vector<128x3xf32>
    %5 = arith.truncf %4 : vector<128x3xf32> to vector<128x3xbf16>
    %c0_5 = arith.constant 0 : index
    %c0_6 = arith.constant 0 : index
    %6 = vector.load %arg4[%c0_5, %c0_6] : memref<3x128xbf16, #tpu.memory_space<vmem>>, vector<3x128xbf16>
    %cst_7 = arith.constant dense<0.000000e+00> : vector<128x128xf32>
    %7 = tpu.matmul %5, %6, %cst_7 {dimension_numbers = #tpu.dot_dimension_numbers<[1], [0], [0], [1], [0, 0, 1, 1], [], []>} : vector<128x3xbf16>, vector<3x128xbf16>, vector<128x128xf32> -> vector<128x128xf32>
    %8 = arith.addf %3, %7 : vector<128x128xf32>
    %c0_8 = arith.constant 0 : index
    %c0_9 = arith.constant 0 : index
    %9 = vector.load %arg5[%c0_8, %c0_9] : memref<1x128xf32, #tpu.memory_space<vmem>>, vector<1x128xf32>
    %10 = vector.broadcast %9 : vector<1x128xf32> to vector<128x128xf32>
    %11 = arith.addf %8, %10 : vector<128x128xf32>
    %12 = arith.negf %11 : vector<128x128xf32>
    %13 = math.exp %12 : vector<128x128xf32>
    %cst_10 = arith.constant 1.000000e+00 : f32
    %14 = vector.broadcast %cst_10 : f32 to vector<128x128xf32>
    %15 = arith.addf %14, %13 : vector<128x128xf32>
    %16 = arith.divf %14, %15 : vector<128x128xf32>
    %17 = arith.truncf %16 : vector<128x128xf32> to vector<128x128xbf16>
    %c0_11 = arith.constant 0 : index
    %c0_12 = arith.constant 0 : index
    %18 = vector.load %arg6[%c0_11, %c0_12] : memref<128x128xbf16, #tpu.memory_space<vmem>>, vector<128x128xbf16>
    %cst_13 = arith.constant dense<0.000000e+00> : vector<128x128xf32>
    %19 = tpu.matmul %17, %18, %cst_13 {dimension_numbers = #tpu.dot_dimension_numbers<[1], [0], [0], [1], [0, 0, 1, 1], [], []>} : vector<128x128xbf16>, vector<128x128xbf16>, vector<128x128xf32> -> vector<128x128xf32>
    %c0_14 = arith.constant 0 : index
    %c0_15 = arith.constant 0 : index
    %20 = vector.load %arg7[%c0_14, %c0_15] : memref<1x128xf32, #tpu.memory_space<vmem>>, vector<1x128xf32>
    %21 = vector.broadcast %20 : vector<1x128xf32> to vector<128x128xf32>
    %22 = arith.addf %19, %21 : vector<128x128xf32>
    %23 = arith.negf %22 : vector<128x128xf32>
    %24 = math.exp %23 : vector<128x128xf32>
    %cst_16 = arith.constant 1.000000e+00 : f32
    %25 = vector.broadcast %cst_16 : f32 to vector<128x128xf32>
    %26 = arith.addf %25, %24 : vector<128x128xf32>
    %27 = arith.divf %25, %26 : vector<128x128xf32>
    %c0_17 = arith.constant 0 : index
    %c0_18 = arith.constant 0 : index
    %28 = vector.load %arg8[%c0_17, %c0_18] : memref<8x128xbf16, #tpu.memory_space<vmem>>, vector<8x128xbf16>
    %29 = arith.truncf %27 : vector<128x128xf32> to vector<128x128xbf16>
    %cst_19 = arith.constant dense<0.000000e+00> : vector<8x128xf32>
    %30 = tpu.matmul %28, %29, %cst_19 {dimension_numbers = #tpu.dot_dimension_numbers<[1], [1], [0], [0], [0, 0, 1, 0], [], []>} : vector<8x128xbf16>, vector<128x128xbf16>, vector<8x128xf32> -> vector<8x128xf32>
    %c0_20 = arith.constant 0 : index
    %c0_21 = arith.constant 0 : index
    %31 = vector.load %arg9[%c0_20, %c0_21] : memref<8x128xf32, #tpu.memory_space<vmem>>, vector<8x128xf32>
    tpu.vector_store %arg9[%c0_20, %c0_21], %30 {strides = array<i32>} : memref<8x128xf32, #tpu.memory_space<vmem>>, vector<8x128xf32>,
    return
  }
  func.func @transform_0(%arg0: i32) -> (i32, i32) {
    %c0_i32 = arith.constant 0 : i32
    %c0_i32_0 = arith.constant 0 : i32
    return %arg0, %c0_i32 : i32, i32
  }
  func.func @transform_1(%arg0: i32) -> (i32, i32) {
    %c0_i32 = arith.constant 0 : i32
    %c0_i32_0 = arith.constant 0 : i32
    return %arg0, %c0_i32 : i32, i32
  }
  func.func @transform_2(%arg0: i32) -> (i32, i32) {
    %c0_i32 = arith.constant 0 : i32
    %c0_i32_0 = arith.constant 0 : i32
    %c0_i32_1 = arith.constant 0 : i32
    return %c0_i32, %c0_i32_0 : i32, i32
  }
  func.func @transform_3(%arg0: i32) -> (i32, i32) {
    %c0_i32 = arith.constant 0 : i32
    %c0_i32_0 = arith.constant 0 : i32
    %c0_i32_1 = arith.constant 0 : i32
    return %c0_i32, %c0_i32_0 : i32, i32
  }
  func.func @transform_4(%arg0: i32) -> (i32, i32) {
    %c0_i32 = arith.constant 0 : i32
    %c0_i32_0 = arith.constant 0 : i32
    %c0_i32_1 = arith.constant 0 : i32
    return %c0_i32, %c0_i32_0 : i32, i32
  }
  func.func @transform_5(%arg0: i32) -> (i32, i32) {
    %c0_i32 = arith.constant 0 : i32
    %c0_i32_0 = arith.constant 0 : i32
    %c0_i32_1 = arith.constant 0 : i32
    return %c0_i32, %c0_i32_0 : i32, i32
  }
  func.func @transform_6(%arg0: i32) -> (i32, i32) {
    %c0_i32 = arith.constant 0 : i32
    %c0_i32_0 = arith.constant 0 : i32
    %c0_i32_1 = arith.constant 0 : i32
    return %c0_i32, %c0_i32_0 : i32, i32
  }
  func.func @transform_7(%arg0: i32) -> (i32, i32) {
    %c0_i32 = arith.constant 0 : i32
    %c0_i32_0 = arith.constant 0 : i32
    %c0_i32_1 = arith.constant 0 : i32
    return %c0_i32, %c0_i32_0 : i32, i32
  }
  func.func @transform_8(%arg0: i32) -> (i32, i32) {
    %c0_i32 = arith.constant 0 : i32
    %c0_i32_0 = arith.constant 0 : i32
    return %c0_i32, %arg0 : i32, i32
  }
}

</mosaic_0001>

<bundles_post_ra>
// kernel: tpu_custom_call.1
= control target key start
LH: loop header
LB: loop body
LE: loop exit
PB: predicated region body
PF: predicated region fallthrough
CT: control target
= control target key end

     0   :  { %13 = vsyncpa [#allocation3], 0  ;;  %s1915_s0 = inlined_call_operand.vmem [shape: f32[256,2], index: 0, kind: input, shape index: {}]   ;;  %s1916_s1 = inlined_call_operand.vmem [shape: f32[256,3], index: 1, kind: input, shape index: {}]   ;;  %s1917_s2 = inlined_call_operand.vmem [shape: bf16[2,128], index: 2, kind: input, shape index: {}]   ;;  %s1918_s3 = inlined_call_operand.vmem [shape: bf16[3,128], index: 3, kind: input, shape index: {}]   ;;  %s1919_s4 = inlined_call_operand.vmem [shape: f32[1,128], index: 4, kind: input, shape index: {}]   ;;  %s1920_s5 = inlined_call_operand.vmem [shape: bf16[128,128], index: 5, kind: input, shape index: {}]   ;;  %s1921_s6 = inlined_call_operand.vmem [shape: f32[1,128], index: 6, kind: input, shape index: {}]   ;;  %s1922_s7 = inlined_call_operand.vmem [shape: bf16[8,128], index: 7, kind: input, shape index: {}]   ;;  %s1923_s8 = inlined_call_operand.hbm [shape: f32[8,256], index: 8, kind: output, shape index: {}]  }
   0x1   :  { %15 = vsyncpa [#allocation3 + $0x1], 0  ;;  %s1651_s27 = smov 0   ;;  %s1653_s28 = smov 0  }
   0x2   :  { %s1655_s29 = smov 0   ;;  %s1657_s30 = smov 0  }
   0x3 LB: > { %s1672_s9 = sadd.s32 4294967295, %s1600_s30   ;;  %s1159_s10 = sadd.s32 4294967294, %s1600_s30   ;;  %s1600_s30 = sphi %s1657_s30, %s1929_s30   ;;  %s1596_s29 = sphi %s1655_s29, %s1928_s29   ;;  %s1592_s28 = sphi %s1653_s28, %s1927_s28   ;;  %s1588_s27 = sphi %s1651_s27, %s1926_s27  }
   0x4   : > { %s1676_s11 = sadd.s32 1, %s1600_s30   ;;  %s206_s12 = sadd.s32 1, %s1596_s29 }
   0x5   : > { %s203_s13 = ssub.s32 %s1600_s30, %s1676_s11  ;;  %p216_p0 = scmp.ne.s32.totalorder %s1596_s29, %s1592_s28 }
   0x6   : > { %p204_p1 = scmp.eq.s32.totalorder %s203_s13, 0  ;;  %p217_p2 = scmp.eq.s32.totalorder %s1672_s9, 1 }
   0x7   : > { %p222_p3 = scmp.ne.s32.totalorder %s1592_s28, %s1588_s27  ;;  %p223_p4 = scmp.eq.s32.totalorder %s1159_s10, 1 }
   0x8   : > { %s1687_s14 = scalar_select %p204_p1, %s1596_s29, %s206_s12  }
   0x9   : > { %p1689_p5 = por %p217_p2, %p216_p0  ;;  %p1693_p6 = por %p223_p4, %p222_p3 }
   0xa   : > { %p1162_p7 = scmp.ge.s32.totalorder %s1600_s30, 1  ;;  %p277_p8 = scmp.lt.s32.totalorder %s1600_s30, 3 }
   0xc   : > { %p278_p9 = pnand %p1162_p7, %p277_p8 }
   0xd   : > { %s1164_s19 = sshll.u32 (!%p278_p9), %s1672_s9, 4  ;;  %s1227_s13 = sshll.u32 (!%p278_p9), %s1672_s9, 7 }
   0xe   : > { %281 = sbr.rel (%p278_p9) target bundleno = 796 (0x31c), region = 52  ;;  %p317_p10 = scmp.lt.s32.totalorder (!%p278_p9), %s1164_s19, 31 }
   0xf   : > { %s1605_s9 = smov (!%p278_p9), [#allocation2]  }
  0x13   : > { %v378_v0 = vld [vmem:[%s1918_s3] sm:$0x3]  ;;  %vm404_vm0 = vcmask 1040384   ;;  %vm405_vm1 = vcmask 1041408   ;;  %v1602_v1 = vmov 65535   ;;  %s1931_s19 = smov (!%p317_p10, %s1164_s19), 31 }
  0x14   : > { %v406_v2 = vsel %vm404_vm0, 4294967295, %v1602_v1  ;;  %v353_v3 = vld [vmem:[%s1917_s2] sm:$0x1]  ;;  %s1165_s22 = sshll.u32 %s1931_s19, 3  ;;  %vm379_vm2 = vcmask 23552   ;;  %vm508_vm3 = vcmask 15360   ;;  %s1876_s19 = scalar_lea.hbm %s1923_s8, %s1227_s13 }
  0x15   : > { %v407_v4 = vsel %vm405_vm1, %v406_v2, 0  ;;  %1361 = vmatprep.subr.msk.bf16.mxu1 %vm404_vm0, %v353_v3  ;;  %v534_v5 = vsel %vm404_vm0, %v353_v3, 0  ;;  %s1709_s25 = scalar_lea.vmem %s1916_s1, %s1165_s22  ;;  %s1714_s12 = scalar_lea.vmem %s1915_s0, %s1165_s22  ;;  %v1404_v55 = vld [vmem:[%s1920_s5 + $0x38] sm:$0xff]   ;;  %v1405_v56 = vld [vmem:[%s1920_s5 + $0x30] sm:$0xff]   ;;  %v1406_v57 = vld [vmem:[%s1920_s5 + $0x28] sm:$0xff]   ;;  %vm1604_vm4 = vmmov 0  }
  0x16   : > { %v409_v6 = vand.u32 %v407_v4, %v378_v0  ;;  %1292 = vmatpush3.bf16.msra.mxu1 %v534_v5  ;;  %v354_v7 = vld [vmem:[%s1709_s25] sm:$0xff]  ;;  %v355_v8 = vld [vmem:[%s1709_s25 + $0x8] sm:$0xff]  ;;  %v356_v12 = vld [vmem:[%s1709_s25 + $0x10] sm:$0xff]  ;;  %s1544_s22 = sshll.u32 %s1605_s9, 4  ;;  %s1545_s22 = int_to_ptr.vmem [resolvable:$false] %s1544_s22 }
  0x17   : > { %v329_v9 = vld [vmem:[%s1714_s12] sm:$0xff]  ;;  %v370_v10 = vpack.c.bf16 %v355_v8, %v354_v7  ;;  %v330_v11 = vld [vmem:[%s1714_s12 + $0x8] sm:$0xff]  ;;  %v357_v13 = vld [vmem:[%s1709_s25 + $0x18] sm:$0xff]  ;;  %s1546_s23 = scalar_lea.vmem %s1545_s22, 256 }
  0x18   : > { %1273 = vmatprep.subr.bf16.mxu0 %v409_v6  ;;  %v345_v14 = vpack.c.bf16 %v330_v11, %v329_v9  ;;  %v371_v15 = vpack.c.bf16 %v357_v13, %v356_v12  ;;  %v331_v16 = vld [vmem:[%s1714_s12 + $0x10] sm:$0xff]  ;;  %v332_v17 = vld [vmem:[%s1714_s12 + $0x18] sm:$0xff]  ;;  %v358_v18 = vld [vmem:[%s1709_s25 + $0x20] sm:$0xff] }
  0x19   : > { %1274 = vmatpush3.bf16.msra.mxu0 %v409_v6  ;;  %1275 = vmatprep.mubr.msk.bf16.mxu0 %vm379_vm2, %v370_v10  ;;  %v346_v19 = vpack.c.bf16 %v332_v17, %v331_v16  ;;  %v359_v20 = vld [vmem:[%s1709_s25 + $0x28] sm:$0xff]  ;;  %v333_v21 = vld [vmem:[%s1714_s12 + $0x20] sm:$0xff]  ;;  %v360_v25 = vld [vmem:[%s1709_s25 + $0x30] sm:$0xff] }
  0x1a   : > { %v334_v22 = vld [vmem:[%s1714_s12 + $0x28] sm:$0xff]  ;;  %1293 = vmatprep.mubr.msk.bf16.mxu1 %vm508_vm3, %v345_v14  ;;  %v372_v23 = vpack.c.bf16 %v359_v20, %v358_v18  ;;  %v361_v26 = vld [vmem:[%s1709_s25 + $0x38] sm:$0xff]  ;;  %v335_v27 = vld [vmem:[%s1714_s12 + $0x30] sm:$0xff]  ;;  %1309 = vmatprep.subr.bf16.mxu0 %v1404_v55 }
  0x1b   : > { %v347_v24 = vpack.c.bf16 %v334_v22, %v333_v21  ;;  %1294 = vmatmul.mubr.msk.bf16.vlgmr.msra.gmra.mxu1 %vm508_vm3, %v346_v19  ;;  %v336_v28 = vld [vmem:[%s1714_s12 + $0x38] sm:$0xff]  ;;  %v362_v29 = vld [vmem:[%s1709_s25 + $0x40] sm:$0xff]  ;;  %v363_v30 = vld [vmem:[%s1709_s25 + $0x48] sm:$0xff]  ;;  %v373_v33 = vpack.c.bf16 %v361_v26, %v360_v25 }
  0x1c   : > { %1276 = vmatmul.mubr.msk.bf16.vlgmr.msra.gmra.mxu0 %vm379_vm2, %v371_v15  ;;  %v337_v31 = vld [vmem:[%s1714_s12 + $0x40] sm:$0xff]  ;;  %v338_v32 = vld [vmem:[%s1714_s12 + $0x48] sm:$0xff]  ;;  %v348_v34 = vpack.c.bf16 %v336_v28, %v335_v27  ;;  %v374_v35 = vpack.c.bf16 %v363_v30, %v362_v29  ;;  %v364_v37 = vld [vmem:[%s1709_s25 + $0x50] sm:$0xff] }
  0x1d   : > { %1279 = vmatprep.mubr.msk.bf16.mxu0 %vm379_vm2, %v372_v23  ;;  %1297 = vmatprep.mubr.msk.bf16.mxu1 %vm508_vm3, %v347_v24  ;;  %v349_v36 = vpack.c.bf16 %v338_v32, %v337_v31  ;;  %v365_v38 = vld [vmem:[%s1709_s25 + $0x58] sm:$0xff]  ;;  %v339_v39 = vld [vmem:[%s1714_s12 + $0x50] sm:$0xff]  ;;  %v366_v41 = vld [vmem:[%s1709_s25 + $0x60] sm:$0xff] }
  0x1e   : > { %v340_v40 = vld [vmem:[%s1714_s12 + $0x58] sm:$0xff]  ;;  %v367_v42 = vld [vmem:[%s1709_s25 + $0x68] sm:$0xff]  ;;  %v341_v43 = vld [vmem:[%s1714_s12 + $0x60] sm:$0xff]  ;;  %v375_v45 = vpack.c.bf16 %v365_v38, %v364_v37  ;;  %1310 = vmatpush3.bf16.msra.mxu0 %v1404_v55 }
  0x1f   : > { %v342_v44 = vld [vmem:[%s1714_s12 + $0x68] sm:$0xff]  ;;  %v350_v46 = vpack.c.bf16 %v340_v40, %v339_v39  ;;  %v376_v47 = vpack.c.bf16 %v367_v42, %v366_v41  ;;  %v368_v49 = vld [vmem:[%s1709_s25 + $0x70] sm:$0xff]  ;;  %v369_v50 = vld [vmem:[%s1709_s25 + $0x78] sm:$0xff]  ;;  %1311 = vmatprep.subr.bf16.mxu0 %v1405_v56  ;;  %s313_s25 = sand.u32 1, %s1592_s28  }
  0x20   : > { %v351_v48 = vpack.c.bf16 %v342_v44, %v341_v43  ;;  %v343_v51 = vld [vmem:[%s1714_s12 + $0x70] sm:$0xff]  ;;  %v344_v52 = vld [vmem:[%s1714_s12 + $0x78] sm:$0xff]  ;;  %v377_v53 = vpack.c.bf16 %v369_v50, %v368_v49  ;;  %v1407_v58 = vld [vmem:[%s1920_s5 + $0x20] sm:$0xff]   ;;  %s1163_s26 = sshll.u32 %s313_s25, 3  ;;  %s1075_s20 = scalar_lea.sflag [#allocation3], %s313_s25 }
  0x21   : > { %v352_v54 = vpack.c.bf16 %v344_v52, %v343_v51  ;;  %v1408_v59 = vld [vmem:[%s1920_s5 + $0x18] sm:$0xff]   ;;  %v1409_v60 = vld [vmem:[%s1920_s5 + $0x10] sm:$0xff]   ;;  %v1410_v61 = vld [vmem:[%s1920_s5 + $0x8] sm:$0xff]   ;;  %s315_s10 = scalar_lea.vmem [#allocation2], %s1163_s26 }
  0x22   : > { %1312 = vmatpush3.bf16.msra.mxu0 %v1405_v56  ;;  %v1411_v62 = vld [vmem:[%s1920_s5] sm:$0xff]   ;;  %s1088_s12 = sshll.u32 %s315_s10, 4  ;;  %s1871_s12 = int_to_ptr.vmem [resolvable:$true] %s1088_s12 }
  0x23   : > { %1298 = vmatmul.mubr.msk.bf16.gmra.mxu1 %vm508_vm3, %v348_v34  ;;  %1313 = vmatprep.subr.bf16.mxu0 %v1406_v57  ;;  %v1791_v1 = vld [vmem:[%s1919_s4] ss:$0 sm:$0xff]  ;;  %s1540_s21 = scalar_lea.vmem %s1871_s12, 128  ;;  %p1547_p0 = scmp.lt.s32.totalorder %s1871_s12, %s1545_s22 }
  0x24   : > { %1280 = vmatmul.mubr.msk.bf16.gmra.mxu0 %vm379_vm2, %v373_v33  ;;  %1301 = vmatprep.mubr.msk.bf16.mxu1 %vm508_vm3, %v349_v36  ;;  %p1541_p11 = scmp.ne.s32.totalorder %s1871_s12, %s1540_s21  ;;  %p1548_p1 = scmp.lt.s32.totalorder %s1546_s23, %s1540_s21 }
  0x25   : > { %1283 = vmatprep.mubr.msk.bf16.mxu0 %vm379_vm2, %v374_v35 }
  0x26   : > { %1314 = vmatpush3.bf16.msra.mxu0 %v1406_v57  ;;  %p1542_p12 = pnand %p1541_p11, %p1689_p5  ;;  %p1549_p2 = por %p1548_p1, %p1547_p0 }
  0x27   : > { %1315 = vmatprep.subr.bf16.mxu0 %v1407_v58 }
  0x28   : > { %p1543_p13 = pneg %p1542_p12 }
  0x2a   : > { %1316 = vmatpush3.bf16.msra.mxu0 %v1407_v58  ;;  %p1550_p3 = pnand %p1549_p2, %p1543_p13 }
  0x2b   : > { %1302 = vmatmul.mubr.msk.bf16.gmra.mxu1 %vm508_vm3, %v350_v46  ;;  %1317 = vmatprep.subr.bf16.mxu0 %v1408_v59 }
  0x2c   : > { %1284 = vmatmul.mubr.msk.bf16.gmra.mxu0 %vm379_vm2, %v375_v45  ;;  %1305 = vmatprep.mubr.msk.bf16.mxu1 %vm508_vm3, %v351_v48 }
  0x2d   : > { %1287 = vmatprep.mubr.msk.bf16.mxu0 %vm379_vm2, %v376_v47 }
  0x2e   : > { %1318 = vmatpush3.bf16.msra.mxu0 %v1408_v59 }
  0x2f   : > { %1319 = vmatprep.subr.bf16.mxu0 %v1409_v60 }
  0x32   : > { %1320 = vmatpush3.bf16.msra.mxu0 %v1409_v60 }
  0x33   : > { %1306 = vmatmul.mubr.msk.bf16.gmra.mxu1 %vm508_vm3, %v352_v54  ;;  %1321 = vmatprep.subr.bf16.mxu0 %v1410_v61 }
  0x34   : > { %1288 = vmatmul.mubr.msk.bf16.gmra.mxu0 %vm379_vm2, %v377_v53 }
  0x36   : > { %1322 = vmatpush3.bf16.msra.mxu0 %v1410_v61 }
  0x37   : > { %1323 = vmatprep.subr.bf16.mxu0 %v1411_v62 }
  0x3a   : > { %1324 = vmatpush3.bf16.msra.mxu0 %v1411_v62 }
  0xdb   : > { %v1295_v0 = vpop.f32.mrf.mxu1 }
  0xdc   : > { %v1277_v63 = vpop.f32.mrf.mxu0 }
  0xdd   : > { %v579_v2 = vadd.f32 %v1295_v0, %v1277_v63  ;;  %v570_v4 = vpop.f32.mrf.mxu1 }
  0xde   : > { %v445_v3 = vpop.f32.mrf.mxu0 }
  0xdf   : > { %v642_v5 = vadd.f32 %v1791_v1, %v579_v2  ;;  %v571_v6 = vadd.f32 %v570_v4, %v445_v3  ;;  %v1296_v8 = vpop.f32.mrf.mxu1 }
  0xe0   : > { %v1278_v7 = vpop.f32.mrf.mxu0 }
  0xe1   : > { %v1187_v9 = vmul.f32 -1.442695, %v642_v5  ;;  %v640_v10 = vadd.f32 %v1791_v1, %v571_v6  ;;  %v582_v11 = vadd.f32 %v1296_v8, %v1278_v7  ;;  %v573_v13 = vpop.f32.mrf.mxu1 }
  0xe2   : > { %v448_v12 = vpop.f32.mrf.mxu0 }
  0xe3   : > { %1412 = vpow2.f32 %v1187_v9  ;;  %v1185_v14 = vmul.f32 -1.442695, %v640_v10  ;;  %v643_v15 = vadd.f32 %v1791_v1, %v582_v11  ;;  %v574_v16 = vadd.f32 %v573_v13, %v448_v12  ;;  %v1299_v18 = vpop.f32.mrf.mxu1 }
  0xe4   : > { %v1281_v17 = vpop.f32.mrf.mxu0 }
  0xe5   : > { %1414 = vpow2.f32 %v1185_v14  ;;  %v1188_v19 = vmul.f32 -1.442695, %v643_v15  ;;  %v641_v20 = vadd.f32 %v1791_v1, %v574_v16  ;;  %v595_v21 = vadd.f32 %v1299_v18, %v1281_v17  ;;  %v586_v23 = vpop.f32.mrf.mxu1 }
  0xe6   : > { %v461_v22 = vpop.f32.mrf.mxu0 }
  0xe7   : > { %1416 = vpow2.f32 %v1188_v19  ;;  %v1186_v24 = vmul.f32 -1.442695, %v641_v20  ;;  %v646_v25 = vadd.f32 %v1791_v1, %v595_v21  ;;  %v587_v26 = vadd.f32 %v586_v23, %v461_v22  ;;  %v1300_v28 = vpop.f32.mrf.mxu1 }
  0xe8   : > { %v1282_v27 = vpop.f32.mrf.mxu0 }
  0xe9   : > { %1418 = vpow2.f32 %v1186_v24  ;;  %v1191_v29 = vmul.f32 -1.442695, %v646_v25  ;;  %v644_v30 = vadd.f32 %v1791_v1, %v587_v26  ;;  %v598_v31 = vadd.f32 %v1300_v28, %v1282_v27  ;;  %v589_v33 = vpop.f32.mrf.mxu1 }
  0xea   : > { %v464_v32 = vpop.f32.mrf.mxu0 }
  0xeb   : > { %1420 = vpow2.f32 %v1191_v29  ;;  %v1189_v34 = vmul.f32 -1.442695, %v644_v30  ;;  %v647_v35 = vadd.f32 %v1791_v1, %v598_v31  ;;  %v590_v36 = vadd.f32 %v589_v33, %v464_v32  ;;  %v1303_v38 = vpop.f32.mrf.mxu1 }
  0xec   : > { %v1285_v37 = vpop.f32.mrf.mxu0 }
  0xed   : > { %1422 = vpow2.f32 %v1189_v34  ;;  %v1192_v39 = vmul.f32 -1.442695, %v647_v35  ;;  %v645_v40 = vadd.f32 %v1791_v1, %v590_v36  ;;  %v611_v41 = vadd.f32 %v1303_v38, %v1285_v37  ;;  %v602_v43 = vpop.f32.mrf.mxu1 }
  0xee   : > { %v477_v42 = vpop.f32.mrf.mxu0 }
  0xef   : > { %1424 = vpow2.f32 %v1192_v39  ;;  %v1190_v44 = vmul.f32 -1.442695, %v645_v40  ;;  %v650_v45 = vadd.f32 %v1791_v1, %v611_v41  ;;  %v603_v46 = vadd.f32 %v602_v43, %v477_v42  ;;  %v1304_v49 = vpop.f32.mrf.mxu1 }
  0xf0   : > { %v1286_v47 = vpop.f32.mrf.mxu0  ;;  %v1413_v48 = vpop.eup %1412 }
  0xf1   : > { %v706_v50 = vadd.f32 1.0, %v1413_v48  ;;  %1426 = vpow2.f32 %v1190_v44  ;;  %v1195_v51 = vmul.f32 -1.442695, %v650_v45  ;;  %v648_v52 = vadd.f32 %v1791_v1, %v603_v46  ;;  %v605_v56 = vpop.f32.mrf.mxu1 }
  0xf2   : > { %v480_v53 = vpop.f32.mrf.mxu0  ;;  %v1415_v54 = vpop.eup %1414  ;;  %v614_v55 = vadd.f32 %v1304_v49, %v1286_v47 }
  0xf3   : > { %1428 = vrcp.f32 %v706_v50  ;;  %v704_v57 = vadd.f32 1.0, %v1415_v54  ;;  %v1193_v58 = vmul.f32 -1.442695, %v648_v52  ;;  %v606_v59 = vadd.f32 %v605_v56, %v480_v53  ;;  %v1307_v63 = vpop.f32.mrf.mxu1 }
  0xf4   : > { %v1289_v60 = vpop.f32.mrf.mxu0  ;;  %v1417_v61 = vpop.eup %1416  ;;  %1430 = vpow2.f32 %v1195_v51  ;;  %v651_v62 = vadd.f32 %v1791_v1, %v614_v55 }
  0xf5   : > { %1432 = vrcp.f32 %v704_v57  ;;  %v707_v0 = vadd.f32 1.0, %v1417_v61  ;;  %v649_v2 = vadd.f32 %v1791_v1, %v606_v59  ;;  %v627_v3 = vadd.f32 %v1307_v63, %v1289_v60  ;;  %v618_v7 = vpop.f32.mrf.mxu1 }
  0xf6   : > { %v493_v4 = vpop.f32.mrf.mxu0  ;;  %v1419_v5 = vpop.eup %1418  ;;  %1434 = vpow2.f32 %v1193_v58  ;;  %v1196_v6 = vmul.f32 -1.442695, %v651_v62 }
  0xf7   : > { %1436 = vrcp.f32 %v707_v0  ;;  %v705_v8 = vadd.f32 1.0, %v1419_v5  ;;  %v1194_v9 = vmul.f32 -1.442695, %v649_v2  ;;  %v654_v10 = vadd.f32 %v1791_v1, %v627_v3  ;;  %v1308_v14 = vpop.f32.mrf.mxu1 }
  0xf8   : > { %v1290_v11 = vpop.f32.mrf.mxu0  ;;  %v1421_v12 = vpop.eup %1420  ;;  %1438 = vpow2.f32 %v1196_v6  ;;  %v619_v13 = vadd.f32 %v618_v7, %v493_v4 }
  0xf9   : > { %1440 = vrcp.f32 %v705_v8  ;;  %v710_v15 = vadd.f32 1.0, %v1421_v12  ;;  %v1199_v16 = vmul.f32 -1.442695, %v654_v10  ;;  %v630_v17 = vadd.f32 %v1308_v14, %v1290_v11  ;;  %v621_v21 = vpop.f32.mrf.mxu1  ;;  %v1814_v10 = vld [vmem:[%s1921_s6] ss:$0 sm:$0xff] }
  0xfa   : > { %v496_v18 = vpop.f32.mrf.mxu0  ;;  %v1423_v19 = vpop.eup %1422  ;;  %1442 = vpow2.f32 %v1194_v9  ;;  %v652_v20 = vadd.f32 %v1791_v1, %v619_v13  ;;  %v1603_v9 = vmov 0.0  }
  0xfb   : > { %1444 = vrcp.f32 %v710_v15  ;;  %v708_v22 = vadd.f32 1.0, %v1423_v19  ;;  %v655_v23 = vadd.f32 %v1791_v1, %v630_v17  ;;  %v622_v24 = vadd.f32 %v621_v21, %v496_v18  ;;  %1341 = vmatprep.subr.bf16.mxu1 %v1603_v9  ;;  %1357 = vmatprep.mubr.msk.bf16.mxu1 %vm1604_vm4, %v1603_v9 }
  0xfc   : > { %v1425_v25 = vpop.eup %1424  ;;  %1446 = vpow2.f32 %v1199_v16  ;;  %v1197_v26 = vmul.f32 -1.442695, %v652_v20 }
  0xfd   : > { %1448 = vrcp.f32 %v708_v22  ;;  %v711_v27 = vadd.f32 1.0, %v1425_v25  ;;  %v1200_v28 = vmul.f32 -1.442695, %v655_v23  ;;  %v653_v29 = vadd.f32 %v1791_v1, %v622_v24 }
  0xfe   : > { %v1427_v30 = vpop.eup %1426  ;;  %1450 = vpow2.f32 %v1197_v26 }
  0xff   : > { %1452 = vrcp.f32 %v711_v27  ;;  %v709_v31 = vadd.f32 1.0, %v1427_v30  ;;  %v1198_v32 = vmul.f32 -1.442695, %v653_v29 }
 0x100   : > { %v1429_v33 = vpop.eup %1428  ;;  %1454 = vpow2.f32 %v1200_v28 }
 0x101   : > { %v1431_v34 = vpop.eup %1430  ;;  %1456 = vrcp.f32 %v709_v31 }
 0x102   : > { %v1433_v35 = vpop.eup %1432  ;;  %1458 = vpow2.f32 %v1198_v32  ;;  %v714_v43 = vadd.f32 1.0, %v1431_v34 }
 0x103   : > { %v1435_v36 = vpop.eup %1434 }
 0x104   : > { %v1437_v37 = vpop.eup %1436  ;;  %v712_v38 = vadd.f32 1.0, %v1435_v36 }
 0x105   : > { %v1439_v39 = vpop.eup %1438  ;;  %v753_v46 = vpack.c.bf16 %v1437_v37, %v1429_v33 }
 0x106   : > { %v1441_v40 = vpop.eup %1440  ;;  %v715_v41 = vadd.f32 1.0, %v1439_v39  ;;  %1460 = vrcp.f32 %v712_v38 }
 0x107   : > { %v1443_v42 = vpop.eup %1442  ;;  %v752_v1 = vpack.c.bf16 %v1441_v40, %v1433_v35 }
 0x108   : > { %v1445_v44 = vpop.eup %1444  ;;  %v713_v45 = vadd.f32 1.0, %v1443_v42  ;;  %1462 = vrcp.f32 %v715_v41 }
 0x109   : > { %v1447_v47 = vpop.eup %1446  ;;  %1325 = vmatprep.mubr.bf16.mxu0 %v752_v1 }
 0x10a   : > { %v1449_v48 = vpop.eup %1448  ;;  %1464 = vrcp.f32 %v713_v45  ;;  %1326 = vmatmul.mubr.bf16.vlgmr.msra.gmra.mxu0 %v753_v46  ;;  %v718_v56 = vadd.f32 1.0, %v1447_v47 }
 0x10b   : > { %v1451_v49 = vpop.eup %1450  ;;  %1466 = vrcp.f32 %v714_v43 }
 0x10c   : > { %v1453_v50 = vpop.eup %1452  ;;  %v716_v51 = vadd.f32 1.0, %v1451_v49 }
 0x10d   : > { %v1455_v52 = vpop.eup %1454  ;;  %v755_v59 = vpack.c.bf16 %v1453_v50, %v1445_v44 }
 0x10e   : > { %v1457_v53 = vpop.eup %1456  ;;  %v719_v54 = vadd.f32 1.0, %v1455_v52  ;;  %1468 = vrcp.f32 %v716_v51 }
 0x10f   : > { %v1459_v55 = vpop.eup %1458  ;;  %v754_v57 = vpack.c.bf16 %v1457_v53, %v1449_v48 }
 0x110   : > { %v717_v58 = vadd.f32 1.0, %v1459_v55  ;;  %1470 = vrcp.f32 %v719_v54 }
 0x111   : > { %1329 = vmatprep.mubr.bf16.mxu0 %v754_v57 }
 0x112   : > { %1472 = vrcp.f32 %v717_v58  ;;  %1330 = vmatmul.mubr.bf16.gmra.mxu0 %v755_v59 }
 0x113   : > { %1474 = vrcp.f32 %v718_v56  ;;  %v1461_v60 = vpop.eup %1460 }
 0x115   : > { %v1463_v61 = vpop.eup %1462 }
 0x117   : > { %v1465_v62 = vpop.eup %1464 }
 0x118   : > { %v1467_v63 = vpop.eup %1466  ;;  %v756_v0 = vpack.c.bf16 %v1465_v62, %v1461_v60 }
 0x119   : > { %v757_v2 = vpack.c.bf16 %v1463_v61, %v1467_v63 }
 0x11a   : > { %1333 = vmatprep.mubr.bf16.mxu0 %v756_v0 }
 0x11b   : > { %1334 = vmatmul.mubr.bf16.gmra.mxu0 %v757_v2  ;;  %v1469_v3 = vpop.eup %1468 }
 0x11d   : > { %v1471_v4 = vpop.eup %1470 }
 0x11f   : > { %v1473_v5 = vpop.eup %1472 }
 0x120   : > { %v1475_v6 = vpop.eup %1474  ;;  %v758_v7 = vpack.c.bf16 %v1473_v5, %v1469_v3 }
 0x121   : > { %v759_v8 = vpack.c.bf16 %v1471_v4, %v1475_v6 }
 0x122   : > { %1337 = vmatprep.mubr.bf16.mxu0 %v758_v7 }
 0x123   : > { %1338 = vmatmul.mubr.bf16.gmra.mxu0 %v759_v8 }
 0x1ca   : > { %v1327_v11 = vpop.f32.mrf.mxu0 }
 0x1cb   : > { %v874_v12 = vadd.f32 %v1327_v11, %v1814_v10 }
 0x1cc   : > { %v865_v13 = vpop.f32.mrf.mxu0 }
 0x1cd   : > { %v1212_v14 = vmul.f32 -1.442695, %v874_v12  ;;  %v866_v15 = vadd.f32 %v1814_v10, %v865_v13 }
 0x1ce   : > { %v1328_v16 = vpop.f32.mrf.mxu0 }
 0x1cf   : > { %1476 = vpow2.f32 %v1212_v14  ;;  %v1210_v17 = vmul.f32 -1.442695, %v866_v15  ;;  %v877_v18 = vadd.f32 %v1328_v16, %v1814_v10 }
 0x1d0   : > { %v868_v19 = vpop.f32.mrf.mxu0 }
 0x1d1   : > { %1478 = vpow2.f32 %v1210_v17  ;;  %v1213_v20 = vmul.f32 -1.442695, %v877_v18  ;;  %v869_v21 = vadd.f32 %v1814_v10, %v868_v19 }
 0x1d2   : > { %v1820_v22 = vpop.f32.mrf.mxu0 }
 0x1d3   : > { %1480 = vpow2.f32 %v1213_v20  ;;  %v1211_v23 = vmul.f32 -1.442695, %v869_v21  ;;  %v890_v11 = vadd.f32 %v1820_v22, %v1814_v10 }
 0x1d4   : > { %v1822_v24 = vpop.f32.mrf.mxu0 }
 0x1d5   : > { %1482 = vpow2.f32 %v1211_v23  ;;  %v1216_v15 = vmul.f32 -1.442695, %v890_v11  ;;  %v882_v20 = vadd.f32 %v1814_v10, %v1822_v24 }
 0x1d6   : > { %v1332_v25 = vpop.f32.mrf.mxu0 }
 0x1d7   : > { %v893_v7 = vadd.f32 %v1332_v25, %v1814_v10 }
 0x1d8   : > { %v1824_v26 = vpop.f32.mrf.mxu0 }
 0x1d9   : > { %v1217_v13 = vmul.f32 -1.442695, %v893_v7  ;;  %v885_v17 = vadd.f32 %v1814_v10, %v1824_v26 }
 0x1db   : > { %v1335_v27 = vpop.f32.mrf.mxu0  ;;  %v1215_v23 = vmul.f32 -1.442695, %v885_v17 }
 0x1dc   : > { %v1477_v28 = vpop.eup %1476  ;;  %v906_v53 = vadd.f32 %v1335_v27, %v1814_v10 }
 0x1dd   : > { %v897_v29 = vpop.f32.mrf.mxu0  ;;  %v978_v31 = vadd.f32 1.0, %v1477_v28  ;;  %v1214_v28 = vmul.f32 -1.442695, %v882_v20 }
 0x1de   : > { %v1479_v30 = vpop.eup %1478  ;;  %v1220_v59 = vmul.f32 -1.442695, %v906_v53  ;;  %v898_v63 = vadd.f32 %v1814_v10, %v897_v29  ;;  %v1024_v53 = vld [vmem:[%s1922_s7] sm:$0xf] }
 0x1df   : > { %v1336_v32 = vpop.f32.mrf.mxu0  ;;  %v976_v34 = vadd.f32 1.0, %v1479_v30  ;;  %1484 = vrcp.f32 %v978_v31 }
 0x1e0   : > { %v1481_v33 = vpop.eup %1480  ;;  %v909_v50 = vadd.f32 %v1336_v32, %v1814_v10  ;;  %v1218_v5 = vmul.f32 -1.442695, %v898_v63 }
 0x1e1   : > { %v979_v35 = vadd.f32 1.0, %v1481_v33  ;;  %v900_v36 = vpop.f32.mrf.mxu0 }
 0x1e2   : > { %v1483_v37 = vpop.eup %1482  ;;  %v1221_v57 = vmul.f32 -1.442695, %v909_v50  ;;  %v901_v61 = vadd.f32 %v1814_v10, %v900_v36 }
 0x1e3   : > { %1486 = vrcp.f32 %v979_v35  ;;  %v977_v38 = vadd.f32 1.0, %v1483_v37  ;;  %v1339_v39 = vpop.f32.mrf.mxu0 }
 0x1e4   : > { %1488 = vrcp.f32 %v976_v34  ;;  %v922_v40 = vadd.f32 %v1339_v39, %v1814_v10  ;;  %v1219_v2 = vmul.f32 -1.442695, %v901_v61 }
 0x1e5   : > { %1490 = vrcp.f32 %v977_v38  ;;  %v913_v41 = vpop.f32.mrf.mxu0 }
 0x1e6   : > { %v1224_v42 = vmul.f32 -1.442695, %v922_v40  ;;  %v914_v1 = vadd.f32 %v1814_v10, %v913_v41 }
 0x1e7   : > { %v1340_v43 = vpop.f32.mrf.mxu0 }
 0x1e8   : > { %1492 = vpow2.f32 %v1224_v42  ;;  %v925_v44 = vadd.f32 %v1340_v43, %v1814_v10  ;;  %v1222_v48 = vmul.f32 -1.442695, %v914_v1 }
 0x1e9   : > { %v916_v45 = vpop.f32.mrf.mxu0 }
 0x1ea   : > { %v1225_v46 = vmul.f32 -1.442695, %v925_v44  ;;  %v917_v47 = vadd.f32 %v1814_v10, %v916_v45 }
 0x1ec   : > { %1494 = vpow2.f32 %v1225_v46  ;;  %v1223_v49 = vmul.f32 -1.442695, %v917_v47  ;;  %v1831_v51 = vpop.eup %1484 }
 0x1ee   : > { %1496 = vpow2.f32 %v1223_v49 }
 0x1ef   : > { %1498 = vpow2.f32 %v1222_v48 }
 0x1f0   : > { %v1833_v52 = vpop.eup %1486  ;;  %1500 = vpow2.f32 %v1221_v57 }
 0x1f1   : > { %v1836_v54 = vpop.eup %1488  ;;  %v1026_v55 = vpack.c.bf16 %v1833_v52, %v1831_v51  ;;  %1502 = vpow2.f32 %v1220_v59 }
 0x1f2   : > { %v1840_v56 = vpop.eup %1490 }
 0x1f3   : > { %v1025_v58 = vpack.c.bf16 %v1840_v56, %v1836_v54 }
 0x1f5   : > { %v1493_v60 = vpop.eup %1492 }
 0x1f6   : > { %v990_v62 = vadd.f32 1.0, %v1493_v60 }
 0x1f8   : > { %1504 = vrcp.f32 %v990_v62 }
 0x1f9   : > { %v1495_v0 = vpop.eup %1494 }
 0x1fa   : > { %v991_v3 = vadd.f32 1.0, %v1495_v0 }
 0x1fb   : > { %v1497_v4 = vpop.eup %1496 }
 0x1fc   : > { %1506 = vrcp.f32 %v991_v3  ;;  %v1499_v6 = vpop.eup %1498  ;;  %v989_v8 = vadd.f32 1.0, %v1497_v4 }
 0x1fd   : > { %1508 = vpow2.f32 %v1219_v2  ;;  %v988_v12 = vadd.f32 1.0, %v1499_v6  ;;  %v1501_v14 = vpop.eup %1500 }
 0x1fe   : > { %1510 = vpow2.f32 %v1218_v5  ;;  %v1503_v16 = vpop.eup %1502  ;;  %v987_v18 = vadd.f32 1.0, %v1501_v14 }
 0x1ff   : > { %1512 = vrcp.f32 %v989_v8  ;;  %v986_v21 = vadd.f32 1.0, %v1503_v16 }
 0x200   : > { %1514 = vrcp.f32 %v988_v12 }
 0x201   : > { %1516 = vpow2.f32 %v1217_v13 }
 0x202   : > { %1518 = vpow2.f32 %v1216_v15 }
 0x203   : > { %1520 = vrcp.f32 %v987_v18 }
 0x204   : > { %1522 = vrcp.f32 %v986_v21 }
 0x205   : > { %v1505_v19 = vpop.eup %1504  ;;  %1524 = vpow2.f32 %v1215_v23 }
 0x206   : > { %1526 = vpow2.f32 %v1214_v28 }
 0x209   : > { %v1507_v22 = vpop.eup %1506 }
 0x20a   : > { %v1032_v25 = vpack.c.bf16 %v1507_v22, %v1505_v19  ;;  %v1509_v27 = vpop.eup %1508 }
 0x20b   : > { %v1511_v29 = vpop.eup %1510  ;;  %v985_v26 = vadd.f32 1.0, %v1509_v27 }
 0x20c   : > { %1342 = vmatpush3.bf16.xpose.msra.mxu1 %v1032_v25  ;;  %v1513_v30 = vpop.eup %1512  ;;  %v984_v31 = vadd.f32 1.0, %v1511_v29 }
 0x20d   : > { %1343 = vmatprep.subr.bf16.mxu1 %v1603_v9  ;;  %v1515_v32 = vpop.eup %1514  ;;  %1528 = vrcp.f32 %v985_v26 }
 0x20e   : > { %v1031_v10 = vpack.c.bf16 %v1513_v30, %v1515_v32  ;;  %v1517_v24 = vpop.eup %1516  ;;  %1530 = vrcp.f32 %v984_v31 }
 0x20f   : > { %v1519_v33 = vpop.eup %1518  ;;  %v983_v34 = vadd.f32 1.0, %v1517_v24 }
 0x210   : > { %v1521_v35 = vpop.eup %1520  ;;  %v982_v36 = vadd.f32 1.0, %v1519_v33 }
 0x211   : > { %v1523_v37 = vpop.eup %1522  ;;  %1532 = vrcp.f32 %v983_v34 }
 0x212   : > { %v1030_v38 = vpack.c.bf16 %v1521_v35, %v1523_v37  ;;  %v1525_v39 = vpop.eup %1524  ;;  %1534 = vrcp.f32 %v982_v36 }
 0x213   : > { %v1527_v40 = vpop.eup %1526  ;;  %v981_v41 = vadd.f32 1.0, %v1525_v39 }
 0x214   : > { %1344 = vmatpush3.bf16.xpose.msra.mxu1 %v1031_v10  ;;  %v980_v43 = vadd.f32 1.0, %v1527_v40 }
 0x215   : > { %1345 = vmatprep.subr.bf16.mxu1 %v1603_v9  ;;  %1536 = vrcp.f32 %v981_v41 }
 0x216   : > { %1538 = vrcp.f32 %v980_v43 }
 0x21a   : > { %v1529_v42 = vpop.eup %1528 }
 0x21b   : > { %v1531_v1 = vpop.eup %1530 }
 0x21c   : > { %1346 = vmatpush3.bf16.xpose.msra.mxu1 %v1030_v38  ;;  %v1029_v44 = vpack.c.bf16 %v1529_v42, %v1531_v1 }
 0x21d   : > { %1347 = vmatprep.subr.bf16.mxu1 %v1603_v9 }
 0x21e   : > { %v1533_v45 = vpop.eup %1532 }
 0x21f   : > { %v1535_v46 = vpop.eup %1534 }
 0x220   : > { %v1028_v47 = vpack.c.bf16 %v1533_v45, %v1535_v46 }
 0x222   : > { %v1537_v48 = vpop.eup %1536 }
 0x223   : > { %v1539_v49 = vpop.eup %1538 }
 0x224   : > { %1348 = vmatpush3.bf16.xpose.msra.mxu1 %v1029_v44  ;;  %v1027_v50 = vpack.c.bf16 %v1537_v48, %v1539_v49 }
 0x225   : > { %1349 = vmatprep.subr.bf16.mxu1 %v1603_v9 }
 0x22c   : > { %1350 = vmatpush3.bf16.xpose.msra.mxu1 %v1028_v47 }
 0x22d   : > { %1351 = vmatprep.subr.bf16.mxu1 %v1603_v9 }
 0x234   : > { %1352 = vmatpush3.bf16.xpose.msra.mxu1 %v1027_v50 }
 0x235   : > { %1353 = vmatprep.subr.bf16.mxu1 %v1603_v9 }
 0x23c   : > { %1354 = vmatpush3.bf16.xpose.msra.mxu1 %v1026_v55 }
 0x23d   : > { %1355 = vmatprep.subr.bf16.mxu1 %v1603_v9 }
 0x244   : > { %1356 = vmatpush3.bf16.xpose.msra.mxu1 %v1025_v58 }
 0x24b   : > { %1358 = vmatmul.mubr.bf16.vlgmr.msra.gmra.mxu1 %v1024_v53 }
 0x30b   : > { %v1067_v9 = vpop.f32.mrf.mxu1 }
 0x30c   : > { %1073 = vst [vmem:[%s315_s10] sm:$0xff] %v1067_v9 }
 0x30d   : > { %v1359_v51 = vpop.f32.mrf.mxu1 }
 0x30e   : > { %1553 = shalt.err (!%p1550_p3)
}
 0x30f   : > { %s1554_s24 = scalar_lea.hbm %s1876_s19, 128  ;;  %s1558_s10 = scalar_lea.hbm %s1923_s8, 256 }
 0x310   : > { %p1555_p4 = scmp.ne.s32.totalorder %s1876_s19, %s1554_s24  ;;  %p1559_p9 = scmp.lt.s32.totalorder %s1876_s19, %s1923_s8 }
 0x311   : > { %p1560_p10 = scmp.lt.s32.totalorder %s1558_s10, %s1554_s24 }
 0x312   : > { %p1556_p7 = pnand %p1555_p4, %p1689_p5 }
 0x313   : > { %p1561_p11 = por %p1560_p10, %p1559_p9 }
 0x314   : > { %p1557_p8 = pneg %p1556_p7 }
 0x316   : > { %p1562_p12 = pnand %p1561_p11, %p1557_p8 }
 0x318   : > { %1565 = shalt.err (!%p1562_p12)
}
 0x319   : > { %1362 = dma.vmem_to_hbm [thread:$0]  (%p1689_p5), %s1871_s12, 128, %s1876_s19, %s1075_s20   ;;  %v1070_v52 = vpop.f32.mrf.mxu1 }
 0x31b   : > { %v1360_v54 = vpop.f32.mrf.mxu1 }
 0x31c PF: > { %p1368_p13 = scmp.ge.s32.totalorder %s1600_s30, 2  ;;  %s1100_s18 = sand.u32 1, %s1588_s27  }
 0x31d   : > { %s1101_s21 = scalar_lea.sflag [#allocation3], %s1100_s18 }
 0x31e   : > { %p1365_p0 = pnand %p1368_p13, %p1693_p6 }
 0x320   : > { %p1366_p1 = pneg %p1365_p0 }
 0x322   : > { %1583 = dma.done.wait (%p1366_p1), %s1101_s21, 128  }
 0x323   : > { %1585 = vsyncadd (%p1366_p1), %s1101_s21, 4294967168  ;;  %p18_p5 = scmp.ge.s32.totalorder %s1676_s11, 4   ;;  %s1926_s27 = smov %s1592_s28 }
 0x324   : > { %s1927_s28 = smov %s1596_s29  ;;  %s1928_s29 = smov %s1687_s14 }
 0x325   : > { %s1929_s30 = smov %s1676_s11  ;;  %20 = sbr.rel (!%p18_p5) target bundleno = 3 (0x3), region = 90 }
 0x32a   :  { %1106 = vsyncpa [#allocation3], 1 }
 0x32b   :  { %1108 = vsyncpa [#allocation3 + $0x1], 1 }

</bundles_post_ra>
